<compile_context>
chip_gen: v7x
topology: tpu7x:2x2x1
jax: 0.10.0
libtpu: 0.0.40
codegen_flags: <defaults>
</compile_context>

<pallas_src>
from functools import partial

import jax
import jax.numpy as jnp
from jax.experimental import pallas as pl
from jax.experimental.pallas import tpu as pltpu

_LANES = 128
_MAX_BLOCK_ROWS = 4096          # (4096, 128) f32 tile = 2 MiB; 8 MiB double-buffered in+out.
_MIN_PALLAS_ELEMS = 8 * _LANES  # below one (8,128) tile, launch overhead dominates -> use XLA.


def _sigmoid_kernel(x_ref, o_ref, *, compute_dtype):
    x = x_ref[...].astype(compute_dtype)
    # Exact, overflow-free sigmoid: sigmoid(x) = 0.5 * (tanh(x/2) + 1).
    # One transcendental per element (EUP slot); matches torch.sigmoid/jax.nn.sigmoid.
    y = 0.5 * (jnp.tanh(0.5 * x) + 1.0)
    o_ref[...] = y.astype(o_ref.dtype)


def _compute_dtype_for(dtype):
    """bf16 math only where the VPU/EUP support it (v6e / v7x); f32 otherwise."""
    if jnp.dtype(dtype) == jnp.dtype(jnp.bfloat16):
        try:
            kind = jax.devices()[0].device_kind.lower()
        except Exception:
            kind = ""
        if ("v6" in kind) or ("v7" in kind) or ("7x" in kind):
            return jnp.bfloat16
    return jnp.float32


def _round_up(v: int, m: int) -> int:
    return ((v + m - 1) // m) * m


def _sigmoid_2d(x2d: jax.Array) -> jax.Array:
    """Elementwise sigmoid over a (rows, 128) array via one pallas_call."""
    rows = x2d.shape[0]
    block_rows = min(_MAX_BLOCK_ROWS, max(8, _round_up(rows, 8)))
    grid = (pl.cdiv(rows, block_rows),)

    itemsize = jnp.dtype(x2d.dtype).itemsize
    cost = pl.CostEstimate(
        flops=4 * x2d.size,
        transcendentals=x2d.size,
        bytes_accessed=2 * x2d.size * itemsize,
    )

    kernel = partial(_sigmoid_kernel, compute_dtype=_compute_dtype_for(x2d.dtype))

    return pl.pallas_call(
        kernel,
        out_shape=jax.ShapeDtypeStruct(x2d.shape, x2d.dtype),
        grid_spec=pltpu.PrefetchScalarGridSpec(
            num_scalar_prefetch=0,
            grid=grid,
            in_specs=[pl.BlockSpec((block_rows, _LANES), lambda i: (i, 0))],
            out_specs=pl.BlockSpec((block_rows, _LANES), lambda i: (i, 0)),
        ),
        compiler_params=pltpu.CompilerParams(
            dimension_semantics=("parallel",),
        ),
        cost_estimate=cost,
    )(x2d)


def pallas_sigmoid(x: jax.Array) -> jax.Array:
    """Elementwise sigmoid, any shape/dtype.

    Large, lane-aligned bulk goes through the Pallas kernel (1 read + 1 write per
    element); tiny tensors and the <128-element ragged tail use jax.nn.sigmoid so
    no pad/unpad copies are ever materialized.
    """
    orig_shape = x.shape
    n = x.size
    if n < _MIN_PALLAS_ELEMS:
        return jax.nn.sigmoid(x)

    flat = x.reshape(-1)  # free for contiguous arrays
    n_main = (n // _LANES) * _LANES
    main = _sigmoid_2d(flat[:n_main].reshape(n_main // _LANES, _LANES)).reshape(-1)

    if n_main == n:
        out = main
    else:
        tail = jax.nn.sigmoid(flat[n_main:])  # < 128 elements
        out = jnp.concatenate([main, tail])
    return out.reshape(orig_shape)


def sigmoid_postprocess(output: dict, target):
    """JAX/Pallas equivalent of SigmoidPostProcess.forward.

    Applies sigmoid to every tensor under output['cls']; everything else
    (other output entries and `target`) passes through untouched.
    """
    if "cls" not in output:
        return output, target

    new_cls = {k: pallas_sigmoid(v) for k, v in output["cls"].items()}
    out = dict(output)
    out["cls"] = new_cls
    return out, target


if __name__ == "__main__":
    key = jax.random.PRNGKey(0)
    k1, k2, k3, k4, k5, k6 = jax.random.split(key, 6)

    # Small NCHW-style logits, consistent with a segmentation head output dict.
    output = {
        "cls": {
            "head_a": jax.random.normal(k1, (2, 4, 16, 16), dtype=jnp.float32),   # Pallas path
            "head_b": jax.random.normal(k2, (2, 1, 8, 8), dtype=jnp.float32),     # tiny -> XLA path
            "head_c": jax.random.normal(k5, (2, 3, 16, 16), dtype=jnp.float32
                                        ).astype(jnp.bfloat16),                   # Pallas path (bf16)
            "head_d": jax.random.normal(k6, (3, 5, 7), dtype=jnp.float32),        # lane-unfriendly, tiny
        },
        "aux": jax.random.normal(k3, (2, 4, 16, 16), dtype=jnp.float32),  # untouched
    }
    target = jax.random.randint(k4, (2, 16, 16), 0, 4)

    out, tgt = sigmoid_postprocess(output, target)
    for k in out["cls"]:
        jax.block_until_ready(out["cls"][k])

    # Verify against plain-JAX reference.
    for k in output["cls"]:
        ref = jax.nn.sigmoid(output["cls"][k].astype(jnp.float32))
        got = out["cls"][k].astype(jnp.float32)
        tol = 2e-2 if output["cls"][k].dtype == jnp.bfloat16 else 1e-5
        assert out["cls"][k].dtype == output["cls"][k].dtype, f"dtype changed in cls[{k}]"
        assert out["cls"][k].shape == output["cls"][k].shape, f"shape changed in cls[{k}]"
        assert jnp.allclose(got, ref, atol=tol), f"mismatch in cls[{k}]"

    # Non-'cls' entries and target must pass through untouched.
    assert out["aux"] is output["aux"]
    assert tgt is target

    print("KERNEL_OK")
</pallas_src>

<mosaic_0001>
module attributes {stable_mosaic.version = 11 : i64} {
  func.func @_sigmoid_kernel(%arg0: i32, %arg1: memref<16x128xf32, #tpu.memory_space<vmem>>, %arg2: memref<16x128xf32, #tpu.memory_space<vmem>>) attributes {dimension_semantics = [#tpu.dimension_semantics<parallel>], iteration_bounds = array<i64: 1>, scalar_prefetch = 0 : i64, scratch_operands = 0 : i64, tpu.core_type = #tpu.core_type<tc>, window_params = [{transform_indices = @transform_0, window_bounds = array<i64: 16, 128>}, {transform_indices = @transform_1, window_bounds = array<i64: 16, 128>}]} {
    %c0 = arith.constant 0 : index
    %c0_0 = arith.constant 0 : index
    %0 = vector.load %arg1[%c0, %c0_0] : memref<16x128xf32, #tpu.memory_space<vmem>>, vector<16x128xf32>
    %cst = arith.constant 5.000000e-01 : f32
    %1 = vector.broadcast %cst : f32 to vector<16x128xf32>
    %2 = arith.mulf %1, %0 : vector<16x128xf32>
    %3 = math.tanh %2 : vector<16x128xf32>
    %cst_1 = arith.constant 1.000000e+00 : f32
    %4 = vector.broadcast %cst_1 : f32 to vector<16x128xf32>
    %5 = arith.addf %3, %4 : vector<16x128xf32>
    %cst_2 = arith.constant 5.000000e-01 : f32
    %6 = vector.broadcast %cst_2 : f32 to vector<16x128xf32>
    %7 = arith.mulf %6, %5 : vector<16x128xf32>
    %c0_3 = arith.constant 0 : index
    %c0_4 = arith.constant 0 : index
    %8 = vector.load %arg2[%c0_3, %c0_4] : memref<16x128xf32, #tpu.memory_space<vmem>>, vector<16x128xf32>
    tpu.vector_store %arg2[%c0_3, %c0_4], %7 {strides = array<i32>} : memref<16x128xf32, #tpu.memory_space<vmem>>, vector<16x128xf32>,
    return
  }
  func.func @transform_0(%arg0: i32) -> (i32, i32) {
    %c0_i32 = arith.constant 0 : i32
    %c0_i32_0 = arith.constant 0 : i32
    return %arg0, %c0_i32 : i32, i32
  }
  func.func @transform_1(%arg0: i32) -> (i32, i32) {
    %c0_i32 = arith.constant 0 : i32
    %c0_i32_0 = arith.constant 0 : i32
    return %arg0, %c0_i32 : i32, i32
  }
}

</mosaic_0001>

<bundles_post_ra>
// kernel: tpu_custom_call.1
= control target key start
LH: loop header
LB: loop body
LE: loop exit
PB: predicated region body
PF: predicated region fallthrough
CT: control target
= control target key end

     0   :  { %6 = vsyncpa [#allocation3], 0  ;;  %s152_s0 = inlined_call_operand.hbm [shape: f32[16,128], index: 0, kind: input, shape index: {}]   ;;  %s153_s1 = inlined_call_operand.hbm [shape: f32[16,128], index: 1, kind: output, shape index: {}]  }
   0x1   :  { %7 = vsyncpa [#allocation4], 0  ;;  %s108_s6 = smov [#allocation2]   ;;  %s60_s10 = scalar_lea.hbm %s152_s0, 256 }
   0x2   :  { %s13_s7 = sshll.u32 %s108_s6, 4  ;;  %p61_p0 = scmp.ne.s32.totalorder %s152_s0, %s60_s10  ;;  %s14_s7 = int_to_ptr.vmem [resolvable:$true] %s13_s7 }
   0x3   :  { %p64_p1 = scmp.lt.u32.totalorder %s60_s10, %s152_s0 }
   0x5   :  { %p66_p2 = pnand %p64_p1, %p61_p0 }
   0x7   :  { %69 = shalt.err (!%p66_p2)
}
   0x8   :  { %s70_s15 = scalar_lea.vmem %s14_s7, 256  ;;  %p75_p4 = scmp.lt.s32.totalorder %s14_s7, %s14_s7 }
   0x9   :  { %p71_p3 = scmp.ne.s32.totalorder %s14_s7, %s70_s15  ;;  %p76_p5 = scmp.lt.s32.totalorder %s70_s15, %s70_s15 }
   0xb   :  { %p77_p6 = por %p76_p5, %p75_p4 }
   0xd   :  { %p78_p7 = pnand %p77_p6, %p71_p3 }
   0xf   :  { %81 = shalt.err (!%p78_p7)
}
  0x10   :  { %s109_s16 = smov 128   ;;  %s110_s17 = smov 8  }
  0x11   :  { %19 = dma.hbm_to_vmem [thread:$0]  %s152_s0, 256, %s14_s7, [#allocation3], %s109_s16, %s109_s16, %s110_s17  }
  0x12   :  { %104 = dma.done.wait [#allocation3], 256  }
  0x13   :  { %105 = vsyncadd [#allocation3], 4294967040  ;;  %v23_v0 = vld [vmem:[#allocation2] sm:$0xff]  ;;  %v24_v1 = vld [vmem:[#allocation2 + $0x8] sm:$0xff]  ;;  %s111_s20 = smov [#allocation5]  }
  0x14   :  { %v25_v2 = vmul.f32 0.5, %v23_v0  ;;  %v26_v3 = vmul.f32 0.5, %v24_v1  ;;  %s40_s21 = sshll.u32 %s111_s20, 4  ;;  %s41_s21 = int_to_ptr.vmem [resolvable:$true] %s40_s21 }
  0x15   :  { %s82_s0 = scalar_lea.vmem %s41_s21, 256  ;;  %p87_p9 = scmp.lt.s32.totalorder %s41_s21, %s41_s21 }
  0x16   :  { %56 = vtanh.f32 %v25_v2  ;;  %p83_p8 = scmp.ne.s32.totalorder %s41_s21, %s82_s0  ;;  %p88_p10 = scmp.lt.s32.totalorder %s82_s0, %s82_s0 }
  0x17   :  { %58 = vtanh.f32 %v26_v3 }
  0x18   :  { %p89_p11 = por %p88_p10, %p87_p9 }
  0x1a   :  { %p90_p12 = pnand %p89_p11, %p83_p8 }
  0x20   :  { %v57_v4 = vpop.eup %56 }
  0x21   :  { %v59_v5 = vpop.eup %58  ;;  %v29_v6 = vadd.f32 1.0, %v57_v4 }
  0x22   :  { %v30_v7 = vadd.f32 1.0, %v59_v5 }
  0x23   :  { %v31_v8 = vmul.f32 0.5, %v29_v6 }
  0x24   :  { %v32_v9 = vmul.f32 0.5, %v30_v7 }
  0x25   :  { %33 = vst [vmem:[#allocation5] sm:$0xff] %v31_v8 }
  0x26   :  { %34 = vst [vmem:[#allocation5 + $0x8] sm:$0xff] %v32_v9 }
  0x27   :  { %93 = shalt.err (!%p90_p12)
}
  0x28   :  { %s94_s24 = scalar_lea.hbm %s153_s1, 256 }
  0x29   :  { %p95_p13 = scmp.ne.s32.totalorder %s153_s1, %s94_s24  ;;  %p98_p0 = scmp.lt.u32.totalorder %s94_s24, %s153_s1 }
  0x2b   :  { %p100_p1 = pnand %p98_p0, %p95_p13 }
  0x2d   :  { %103 = shalt.err (!%p100_p1)
}
  0x2e   :  { %46 = dma.vmem_to_hbm [thread:$0]  %s41_s21, 256, %s153_s1, [#allocation4], %s109_s16, %s109_s16, %s110_s17  }
  0x2f   :  { %106 = dma.done.wait [#allocation4], 256  }
  0x30   :  { %107 = vsyncadd [#allocation4], 4294967040 }
  0x31   :  { %50 = vsyncpa [#allocation3], 1 }
  0x32   :  { %51 = vsyncpa [#allocation4], 1 }

</bundles_post_ra>
